<compile_context>
chip_gen: v7x
topology: tpu7x:2x2x1
jax: 0.10.0
libtpu: 0.0.40
codegen_flags: <defaults>
</compile_context>

<pallas_src>
import jax
import jax.numpy as jnp
from jax.experimental import pallas as pl
from jax.experimental.pallas import tpu as pltpu  # noqa: F401  (TPU backend)

# Small, module-consistent shapes.
N = 16          # number of graph nodes
FEATURES = 32   # per-node feature size
HEADS = 4       # num_heads h
OUT = FEATURES // HEADS
LAYERS = 2
DROPOUT_P = 0.1  # eval mode -> identity

HN = HEADS * N        # 64: head-batched attention lane width
HO = HEADS * OUT      # 32: concatenated head output width (== FEATURES)

NEG_SLOPE_ATTN = 0.2   # DGL GATConv default negative_slope for attention
NEG_SLOPE_ACT = 0.01   # F.leaky_relu default negative_slope (layer activation)
NEG_INF = -1e9


def _leaky_relu(x, slope):
    return jnp.where(x >= 0, x, slope * x)


def fused_gat_kernel(x_ref, w_ref, alr_ref, bias_ref, blk_ref, o_ref):
    """All LAYERS GATConv layers in one kernel invocation (everything in VMEM).

    Head-batched layout: logits/probabilities for every head of one dst node
    share a single row -- lane index hd*N + j is (head hd, src node j).
    """
    h = x_ref[...]                       # (N, F) current node features (f32)
    bias = bias_ref[...]                 # (N, HN)  additive mask: 0 / NEG_INF
    blk = blk_ref[...]                   # (HN, HO) 0/1 block-diagonal head mask

    for layer in range(LAYERS):          # static unroll (LAYERS = 2)
        w = w_ref[layer]                 # (F, HO)
        alr = alr_ref[layer]             # (HO, HN + HEADS) = [AR_expanded | AL_block]

        # Shared projection + ALL attention logits: two MXU matmuls per layer.
        feat = jnp.dot(h, w, preferred_element_type=jnp.float32)       # (N, HO)
        lg = jnp.dot(feat, alr, preferred_element_type=jnp.float32)    # (N, HN + H)
        er_exp = lg[:, :HN]              # dst logits, already expanded to (N, HN)
        el = lg[:, HN:]                  # (N, HEADS) src-side logits

        # el as a (1, HN) row vector: column hd*N + j holds el[j, hd].
        el_t = el.T                                                     # (H, N)
        el_flat = jnp.concatenate(
            [el_t[hd:hd + 1, :] for hd in range(HEADS)], axis=1)        # (1, HN)

        # Head-batched masked softmax numerator: one max / one exp for all heads.
        e = _leaky_relu(er_exp + el_flat, NEG_SLOPE_ATTN) + bias        # (N, HN)
        e = e - jnp.max(e, axis=-1, keepdims=True)
        # Masked lanes hold ~NEG_INF - rowmax -> exp underflows to exactly 0.0.
        # (Softmax math must stay f32 for this to hold.)
        p = jnp.exp(e)                                                  # (N, HN)

        # One block-diagonal aggregation matmul replaces 4 per-head dots +
        # concat; the same matmul against the 0/1 block mask yields the
        # per-head softmax denominators already expanded to (N, HO).
        feat_bd = jnp.broadcast_to(
            feat[None, :, :], (HEADS, N, HO)).reshape(HN, HO) * blk     # (HN, HO)
        agg = jnp.dot(p, feat_bd, preferred_element_type=jnp.float32)   # (N, HO)
        denom = jnp.dot(p, blk, preferred_element_type=jnp.float32)     # (N, HO)
        # Deferred, EXACT normalization (approx reciprocal previously compounded
        # to ~4e-3 error); denom >= exp(self-loop logit - rowmax) > 0.
        h = agg / denom

        if layer + 1 < LAYERS:
            h = _leaky_relu(h, NEG_SLOPE_ACT)

    # Single lane-dense store of the final embedding.
    o_ref[...] = h.astype(o_ref.dtype)


def _attn_matrix(al, ar):
    """(H, OUT) attn vectors -> (HO, HN + H) matrix [AR_expanded | AL_block].

    AR_expanded[hd*OUT + d, hd'*N + j] = ar[hd, d] * (hd == hd')   (dst term,
    pre-broadcast over all N src columns), AL_block[hd*OUT + d, hd'] =
    al[hd, d] * (hd == hd'), so a single feat @ ALR computes every attention
    logit reduction on the MXU.
    """
    eye_h = jnp.eye(HEADS, dtype=jnp.float32)
    ar_exp = jnp.broadcast_to(
        ar[:, :, None, None] * eye_h[:, None, :, None],
        (HEADS, OUT, HEADS, N)).reshape(HO, HN)
    al_blk = (al[:, :, None] * eye_h[:, None, :]).reshape(HO, HEADS)
    return jnp.concatenate([ar_exp, al_blk], axis=1)


def road_graph_embedding(x, adj, params):
    """Forward pass of PTRoadGraphEmbedding (eval mode), one fused pallas_call."""
    w_stack = jnp.stack([w for (w, _, _) in params])                        # (L, F, HO)
    alr_stack = jnp.stack([_attn_matrix(al, ar) for (_, al, ar) in params])  # (L, HO, HN+H)

    # Additive mask bias (layer-invariant), tiled once per head along lanes.
    bias = jnp.tile(jnp.where(adj > 0.0, 0.0, NEG_INF).astype(jnp.float32),
                    (1, HEADS))                                              # (N, HN)
    # 0/1 block-diagonal head mask: [hd*N + j, hd'*OUT + d] = (hd == hd').
    blk = jnp.kron(jnp.eye(HEADS, dtype=jnp.float32),
                   jnp.ones((N, OUT), jnp.float32))                          # (HN, HO)

    # NOTE: a single graph => no grid. If a batch of graphs / timesteps is ever
    # processed, add a leading "parallel" grid axis over the batch (>= 8 graphs
    # per step, lane-dense multiple-of-128 output) so v7x's two TensorCores are
    # both used and per-step pipeline overhead is amortized.
    out = pl.pallas_call(
        fused_gat_kernel,
        out_shape=jax.ShapeDtypeStruct((N, FEATURES), jnp.float32),
        in_specs=[
            pl.BlockSpec((N, FEATURES), lambda: (0, 0)),
            pl.BlockSpec((LAYERS, FEATURES, HO), lambda: (0, 0, 0)),
            pl.BlockSpec((LAYERS, HO, HN + HEADS), lambda: (0, 0, 0)),
            pl.BlockSpec((N, HN), lambda: (0, 0)),
            pl.BlockSpec((HN, HO), lambda: (0, 0)),
        ],
        out_specs=pl.BlockSpec((N, FEATURES), lambda: (0, 0)),
    )(x, w_stack, alr_stack, bias, blk)

    # nn.Dropout: identity in eval mode.
    # TODO(synk): DGL graph object / g.ndata['x'] assignment has no JAX
    # equivalent; the dense adjacency mask stands in for g and we return x only.
    return out


# ----------------------------- pure-JAX reference ----------------------------
def gat_layer_ref(x, w, al, ar, adj, *, apply_activation):
    feat = (x @ w).reshape(N, HEADS, OUT)
    el = jnp.sum(feat * al[None], axis=-1)      # (N, H) src
    er = jnp.sum(feat * ar[None], axis=-1)      # (N, H) dst
    e = _leaky_relu(er[:, None, :] + el[None, :, :], NEG_SLOPE_ATTN)  # (N,N,H)
    mask = (adj > 0.0)[:, :, None]
    e = jnp.where(mask, e, NEG_INF)
    e = e - jnp.max(e, axis=1, keepdims=True)
    p = jnp.where(mask, jnp.exp(e), 0.0)
    alpha = p / jnp.sum(p, axis=1, keepdims=True)
    out = jnp.einsum('ijh,jhd->ihd', alpha, feat).reshape(N, FEATURES)
    if apply_activation:
        out = _leaky_relu(out, NEG_SLOPE_ACT)
    return out


def road_graph_embedding_ref(x, adj, params):
    for i, (w, al, ar) in enumerate(params):
        x = gat_layer_ref(x, w, al, ar, adj,
                          apply_activation=(i + 1 < LAYERS))
    return x


# --------------------------------- driver ------------------------------------
def init_params(key):
    params = []
    for _ in range(LAYERS):
        key, kw, kl, kr = jax.random.split(key, 4)
        std_w = (2.0 / (FEATURES + HEADS * OUT)) ** 0.5        # xavier-ish
        w = std_w * jax.random.normal(kw, (FEATURES, HEADS * OUT), jnp.float32)
        std_a = (2.0 / (1 + OUT)) ** 0.5
        al = std_a * jax.random.normal(kl, (HEADS, OUT), jnp.float32)
        ar = std_a * jax.random.normal(kr, (HEADS, OUT), jnp.float32)
        params.append((w, al, ar))
    return params


if __name__ == "__main__":
    key = jax.random.PRNGKey(0)
    k_x, k_adj, k_p = jax.random.split(key, 3)

    x = jax.random.normal(k_x, (N, FEATURES), jnp.float32)
    adj = ((jax.random.uniform(k_adj, (N, N)) < 0.3) |
           jnp.eye(N, dtype=bool)).astype(jnp.float32)   # self-loops included
    params = init_params(k_p)

    out = road_graph_embedding(x, adj, params)
    out = jax.block_until_ready(out)

    ref = road_graph_embedding_ref(x, adj, params)
    assert out.shape == (N, FEATURES)
    # With exact (deferred) normalization the only differences vs. the reference
    # are fp reduction-order effects (~1e-5); 1e-3 leaves ample margin.
    assert jnp.allclose(out, ref, atol=1e-3, rtol=1e-3), (
        f"max abs err {jnp.max(jnp.abs(out - ref))}")
    print("KERNEL_OK")
</pallas_src>

<mosaic_0001>
module attributes {stable_mosaic.version = 11 : i64} {
  func.func @fused_gat_kernel(%arg0: memref<16x32xf32, #tpu.memory_space<vmem>>, %arg1: memref<2x32x32xf32, #tpu.memory_space<vmem>>, %arg2: memref<2x32x68xf32, #tpu.memory_space<vmem>>, %arg3: memref<16x64xf32, #tpu.memory_space<vmem>>, %arg4: memref<64x32xf32, #tpu.memory_space<vmem>>, %arg5: memref<16x32xf32, #tpu.memory_space<vmem>>) attributes {dimension_semantics = [], scalar_prefetch = 0 : i64, scratch_operands = 0 : i64, tpu.core_type = #tpu.core_type<tc>} {
    %c0 = arith.constant 0 : index
    %c0_0 = arith.constant 0 : index
    %0 = vector.load %arg0[%c0, %c0_0] : memref<16x32xf32, #tpu.memory_space<vmem>>, vector<16x32xf32>
    %c0_1 = arith.constant 0 : index
    %c0_2 = arith.constant 0 : index
    %1 = vector.load %arg3[%c0_1, %c0_2] : memref<16x64xf32, #tpu.memory_space<vmem>>, vector<16x64xf32>
    %c0_3 = arith.constant 0 : index
    %c0_4 = arith.constant 0 : index
    %2 = vector.load %arg4[%c0_3, %c0_4] : memref<64x32xf32, #tpu.memory_space<vmem>>, vector<64x32xf32>
    %c0_5 = arith.constant 0 : index
    %c0_6 = arith.constant 0 : index
    %c0_7 = arith.constant 0 : index
    %3 = vector.load %arg1[%c0_5, %c0_6, %c0_7] : memref<2x32x32xf32, #tpu.memory_space<vmem>>, vector<1x32x32xf32>
    %4 = vector.shape_cast %3 : vector<1x32x32xf32> to vector<32x32xf32>
    %c0_8 = arith.constant 0 : index
    %c0_9 = arith.constant 0 : index
    %c0_10 = arith.constant 0 : index
    %5 = vector.load %arg2[%c0_8, %c0_9, %c0_10] : memref<2x32x68xf32, #tpu.memory_space<vmem>>, vector<1x32x68xf32>
    %6 = vector.shape_cast %5 : vector<1x32x68xf32> to vector<32x68xf32>
    %cst = arith.constant dense<0.000000e+00> : vector<16x32xf32>
    %7 = tpu.matmul %0, %4, %cst {dimension_numbers = #tpu.dot_dimension_numbers<[1], [0], [0], [1], [0, 0, 1, 1], [], []>} : vector<16x32xf32>, vector<32x32xf32>, vector<16x32xf32> -> vector<16x32xf32>
    %cst_11 = arith.constant dense<0.000000e+00> : vector<16x68xf32>
    %8 = tpu.matmul %7, %6, %cst_11 {dimension_numbers = #tpu.dot_dimension_numbers<[1], [0], [0], [1], [0, 0, 1, 1], [], []>} : vector<16x32xf32>, vector<32x68xf32>, vector<16x68xf32> -> vector<16x68xf32>
    %9 = vector.extract_strided_slice %8 {offsets = [0, 0], sizes = [16, 64], strides = [1, 1]} : vector<16x68xf32> to vector<16x64xf32>
    %10 = vector.extract_strided_slice %8 {offsets = [0, 64], sizes = [16, 4], strides = [1, 1]} : vector<16x68xf32> to vector<16x4xf32>
    %11 = tpu.transpose %10, [1, 0] : vector<16x4xf32> -> vector<4x16xf32>
    %12 = vector.extract_strided_slice %11 {offsets = [0, 0], sizes = [1, 16], strides = [1, 1]} : vector<4x16xf32> to vector<1x16xf32>
    %13 = vector.extract_strided_slice %11 {offsets = [1, 0], sizes = [1, 16], strides = [1, 1]} : vector<4x16xf32> to vector<1x16xf32>
    %14 = vector.extract_strided_slice %11 {offsets = [2, 0], sizes = [1, 16], strides = [1, 1]} : vector<4x16xf32> to vector<1x16xf32>
    %15 = vector.extract_strided_slice %11 {offsets = [3, 0], sizes = [1, 16], strides = [1, 1]} : vector<4x16xf32> to vector<1x16xf32>
    %16 = tpu.concatenate %12, %13, %14, %15 in 1 : vector<1x16xf32>, vector<1x16xf32>, vector<1x16xf32>, vector<1x16xf32> -> vector<1x64xf32>
    %17 = vector.broadcast %16 : vector<1x64xf32> to vector<16x64xf32>
    %18 = arith.addf %9, %17 : vector<16x64xf32>
    %cst_12 = arith.constant 0.000000e+00 : f32
    %19 = vector.broadcast %cst_12 : f32 to vector<16x64xf32>
    %20 = arith.cmpf oge, %18, %19 : vector<16x64xf32>
    %cst_13 = arith.constant 2.000000e-01 : f32
    %21 = vector.broadcast %cst_13 : f32 to vector<16x64xf32>
    %22 = arith.mulf %21, %18 : vector<16x64xf32>
    %23 = arith.select %20, %18, %22 : vector<16x64xi1>, vector<16x64xf32>
    %24 = arith.addf %23, %1 : vector<16x64xf32>
    %cst_14 = arith.constant dense<0xFF800000> : vector<16xf32>
    %25 = vector.multi_reduction <maximumf>, %24, %cst_14 [1] : vector<16x64xf32> to vector<16xf32>
    %26 = vector.shape_cast %25 : vector<16xf32> to vector<16x1xf32>
    %27 = vector.broadcast %26 : vector<16x1xf32> to vector<16x64xf32>
    %28 = arith.subf %24, %27 : vector<16x64xf32>
    %29 = math.exp %28 : vector<16x64xf32>
    %30 = vector.shape_cast %7 : vector<16x32xf32> to vector<1x16x32xf32>
    %31 = vector.shape_cast %30 : vector<1x16x32xf32> to vector<1x16x32xf32>
    %32 = vector.broadcast %31 : vector<1x16x32xf32> to vector<4x16x32xf32>
    %33 = vector.shape_cast %32 : vector<4x16x32xf32> to vector<64x32xf32>
    %34 = arith.mulf %33, %2 : vector<64x32xf32>
    %cst_15 = arith.constant dense<0.000000e+00> : vector<16x32xf32>
    %35 = tpu.matmul %29, %34, %cst_15 {dimension_numbers = #tpu.dot_dimension_numbers<[1], [0], [0], [1], [0, 0, 1, 1], [], []>} : vector<16x64xf32>, vector<64x32xf32>, vector<16x32xf32> -> vector<16x32xf32>
    %cst_16 = arith.constant dense<0.000000e+00> : vector<16x32xf32>
    %36 = tpu.matmul %29, %2, %cst_16 {dimension_numbers = #tpu.dot_dimension_numbers<[1], [0], [0], [1], [0, 0, 1, 1], [], []>} : vector<16x64xf32>, vector<64x32xf32>, vector<16x32xf32> -> vector<16x32xf32>
    %37 = arith.divf %35, %36 : vector<16x32xf32>
    %cst_17 = arith.constant 0.000000e+00 : f32
    %38 = vector.broadcast %cst_17 : f32 to vector<16x32xf32>
    %39 = arith.cmpf oge, %37, %38 : vector<16x32xf32>
    %cst_18 = arith.constant 0.00999999977 : f32
    %40 = vector.broadcast %cst_18 : f32 to vector<16x32xf32>
    %41 = arith.mulf %40, %37 : vector<16x32xf32>
    %42 = arith.select %39, %37, %41 : vector<16x32xi1>, vector<16x32xf32>
    %c1 = arith.constant 1 : index
    %c0_19 = arith.constant 0 : index
    %c0_20 = arith.constant 0 : index
    %43 = vector.load %arg1[%c1, %c0_19, %c0_20] : memref<2x32x32xf32, #tpu.memory_space<vmem>>, vector<1x32x32xf32>
    %44 = vector.shape_cast %43 : vector<1x32x32xf32> to vector<32x32xf32>
    %c1_21 = arith.constant 1 : index
    %c0_22 = arith.constant 0 : index
    %c0_23 = arith.constant 0 : index
    %45 = vector.load %arg2[%c1_21, %c0_22, %c0_23] : memref<2x32x68xf32, #tpu.memory_space<vmem>>, vector<1x32x68xf32>
    %46 = vector.shape_cast %45 : vector<1x32x68xf32> to vector<32x68xf32>
    %cst_24 = arith.constant dense<0.000000e+00> : vector<16x32xf32>
    %47 = tpu.matmul %42, %44, %cst_24 {dimension_numbers = #tpu.dot_dimension_numbers<[1], [0], [0], [1], [0, 0, 1, 1], [], []>} : vector<16x32xf32>, vector<32x32xf32>, vector<16x32xf32> -> vector<16x32xf32>
    %cst_25 = arith.constant dense<0.000000e+00> : vector<16x68xf32>
    %48 = tpu.matmul %47, %46, %cst_25 {dimension_numbers = #tpu.dot_dimension_numbers<[1], [0], [0], [1], [0, 0, 1, 1], [], []>} : vector<16x32xf32>, vector<32x68xf32>, vector<16x68xf32> -> vector<16x68xf32>
    %49 = vector.extract_strided_slice %48 {offsets = [0, 0], sizes = [16, 64], strides = [1, 1]} : vector<16x68xf32> to vector<16x64xf32>
    %50 = vector.extract_strided_slice %48 {offsets = [0, 64], sizes = [16, 4], strides = [1, 1]} : vector<16x68xf32> to vector<16x4xf32>
    %51 = tpu.transpose %50, [1, 0] : vector<16x4xf32> -> vector<4x16xf32>
    %52 = vector.extract_strided_slice %51 {offsets = [0, 0], sizes = [1, 16], strides = [1, 1]} : vector<4x16xf32> to vector<1x16xf32>
    %53 = vector.extract_strided_slice %51 {offsets = [1, 0], sizes = [1, 16], strides = [1, 1]} : vector<4x16xf32> to vector<1x16xf32>
    %54 = vector.extract_strided_slice %51 {offsets = [2, 0], sizes = [1, 16], strides = [1, 1]} : vector<4x16xf32> to vector<1x16xf32>
    %55 = vector.extract_strided_slice %51 {offsets = [3, 0], sizes = [1, 16], strides = [1, 1]} : vector<4x16xf32> to vector<1x16xf32>
    %56 = tpu.concatenate %52, %53, %54, %55 in 1 : vector<1x16xf32>, vector<1x16xf32>, vector<1x16xf32>, vector<1x16xf32> -> vector<1x64xf32>
    %57 = vector.broadcast %56 : vector<1x64xf32> to vector<16x64xf32>
    %58 = arith.addf %49, %57 : vector<16x64xf32>
    %cst_26 = arith.constant 0.000000e+00 : f32
    %59 = vector.broadcast %cst_26 : f32 to vector<16x64xf32>
    %60 = arith.cmpf oge, %58, %59 : vector<16x64xf32>
    %cst_27 = arith.constant 2.000000e-01 : f32
    %61 = vector.broadcast %cst_27 : f32 to vector<16x64xf32>
    %62 = arith.mulf %61, %58 : vector<16x64xf32>
    %63 = arith.select %60, %58, %62 : vector<16x64xi1>, vector<16x64xf32>
    %64 = arith.addf %63, %1 : vector<16x64xf32>
    %cst_28 = arith.constant dense<0xFF800000> : vector<16xf32>
    %65 = vector.multi_reduction <maximumf>, %64, %cst_28 [1] : vector<16x64xf32> to vector<16xf32>
    %66 = vector.shape_cast %65 : vector<16xf32> to vector<16x1xf32>
    %67 = vector.broadcast %66 : vector<16x1xf32> to vector<16x64xf32>
    %68 = arith.subf %64, %67 : vector<16x64xf32>
    %69 = math.exp %68 : vector<16x64xf32>
    %70 = vector.shape_cast %47 : vector<16x32xf32> to vector<1x16x32xf32>
    %71 = vector.shape_cast %70 : vector<1x16x32xf32> to vector<1x16x32xf32>
    %72 = vector.broadcast %71 : vector<1x16x32xf32> to vector<4x16x32xf32>
    %73 = vector.shape_cast %72 : vector<4x16x32xf32> to vector<64x32xf32>
    %74 = arith.mulf %73, %2 : vector<64x32xf32>
    %cst_29 = arith.constant dense<0.000000e+00> : vector<16x32xf32>
    %75 = tpu.matmul %69, %74, %cst_29 {dimension_numbers = #tpu.dot_dimension_numbers<[1], [0], [0], [1], [0, 0, 1, 1], [], []>} : vector<16x64xf32>, vector<64x32xf32>, vector<16x32xf32> -> vector<16x32xf32>
    %cst_30 = arith.constant dense<0.000000e+00> : vector<16x32xf32>
    %76 = tpu.matmul %69, %2, %cst_30 {dimension_numbers = #tpu.dot_dimension_numbers<[1], [0], [0], [1], [0, 0, 1, 1], [], []>} : vector<16x64xf32>, vector<64x32xf32>, vector<16x32xf32> -> vector<16x32xf32>
    %77 = arith.divf %75, %76 : vector<16x32xf32>
    %c0_31 = arith.constant 0 : index
    %c0_32 = arith.constant 0 : index
    %78 = vector.load %arg5[%c0_31, %c0_32] : memref<16x32xf32, #tpu.memory_space<vmem>>, vector<16x32xf32>
    tpu.vector_store %arg5[%c0_31, %c0_32], %77 {strides = array<i32>} : memref<16x32xf32, #tpu.memory_space<vmem>>, vector<16x32xf32>,
    return
  }
}

</mosaic_0001>

<bundles_post_ra>
// kernel: tpu_custom_call.1
= control target key start
LH: loop header
LB: loop body
LE: loop exit
PB: predicated region body
PF: predicated region fallthrough
CT: control target
= control target key end

     0   :  { %10 = vsyncpa [#allocation3], 0  ;;  %s1536_s0 = inlined_call_operand.vmem [shape: f32[16,32], index: 0, kind: input, shape index: {}]   ;;  %s1537_s1 = inlined_call_operand.vmem [shape: f32[2,32,32], index: 1, kind: input, shape index: {}]   ;;  %s1538_s2 = inlined_call_operand.hbm [shape: f32[2,32,68], index: 2, kind: input, shape index: {}]   ;;  %s1539_s3 = inlined_call_operand.vmem [shape: f32[16,64], index: 3, kind: input, shape index: {}]   ;;  %s1540_s4 = inlined_call_operand.vmem [shape: f32[64,32], index: 4, kind: input, shape index: {}]   ;;  %s1541_s5 = inlined_call_operand.hbm [shape: f32[16,32], index: 5, kind: output, shape index: {}]  }
   0x1   :  { %11 = vsyncpa [#allocation4], 0  ;;  %s1291_s18 = smov [#allocation2]   ;;  %s1243_s22 = scalar_lea.hbm %s1538_s2, 1024 }
   0x2   :  { %s21_s19 = sshll.u32 %s1291_s18, 4  ;;  %p1244_p0 = scmp.ne.s32.totalorder %s1538_s2, %s1243_s22  ;;  %s22_s19 = int_to_ptr.vmem [resolvable:$true] %s21_s19 }
   0x3   :  { %p1247_p1 = scmp.lt.u32.totalorder %s1243_s22, %s1538_s2 }
   0x5   :  { %p1249_p2 = pnand %p1247_p1, %p1244_p0 }
   0x7   :  { %1252 = shalt.err (!%p1249_p2)
}
   0x8   :  { %s1253_s27 = scalar_lea.vmem %s22_s19, 1024  ;;  %p1258_p4 = scmp.lt.s32.totalorder %s22_s19, %s22_s19 }
   0x9   :  { %p1254_p3 = scmp.ne.s32.totalorder %s22_s19, %s1253_s27  ;;  %p1259_p5 = scmp.lt.s32.totalorder %s1253_s27, %s1253_s27 }
   0xb   :  { %p1260_p6 = por %p1259_p5, %p1258_p4 }
   0xd   :  { %p1261_p7 = pnand %p1260_p6, %p1254_p3 }
   0xf   :  { %1264 = shalt.err (!%p1261_p7)
}
  0x10   :  { %s1292_s28 = smov 128   ;;  %s1293_s29 = smov 8  }
  0x11   :  { %27 = dma.hbm_to_vmem [thread:$0]  %s1538_s2, 1024, %s22_s19, [#allocation3], %s1292_s28, %s1292_s28, %s1293_s29  }
  0x12   :  { %1287 = dma.done.wait [#allocation3], 1024  }
  0x13   :  { %1288 = vsyncadd [#allocation3], 4294966272  ;;  %vm55_vm0 = vcmask 261120   ;;  %v47_v0 = vld [vmem:[%s1537_s1] sm:$0xff]  ;;  %v48_v1 = vld [vmem:[%s1537_s1 + $0x8] sm:$0xff]  ;;  %s1295_s10 = smov 32   ;;  %v276_v44 = vlaneseq }
  0x14   :  { %v49_v2 = vld [vmem:[%s1537_s1 + $0x10] sm:$0xff]  ;;  %v1122_v3 = vpack.c.bf16 %v48_v1, %v47_v0  ;;  %v50_v4 = vld [vmem:[%s1537_s1 + $0x18] sm:$0xff]  ;;  %v35_v5 = vld [vmem:[%s1536_s0] sm:$0xff]  ;;  %s1296_s11 = smov 16   ;;  %s1297_s12 = smov 48   ;;  %vm271_vm1 = vcmask 130048  }
  0x15   :  { %v1126_v6 = vpack.c.bf16 %v50_v4, %v49_v2  ;;  %1010 = vmatprep.mubr.msk.f32.mxu0 %vm55_vm0, %v35_v5  ;;  %v51_v7 = vld [vmem:[#allocation2] sm:$0xff]  ;;  %v52_v8 = vld [vmem:[#allocation2 + $0x8] sm:$0xff]  ;;  %v53_v9 = vld [vmem:[#allocation2 + $0x10] sm:$0xff]  ;;  %v1419_v45 = vshrl.u32 %v276_v44, 7  ;;  %vm274_vm2 = vcmask 392192   ;;  %vm290_vm5 = vcmask 523264  }
  0x16   :  { %1123 = vmatprep.subr.bf16.mxu0 %v1122_v3  ;;  %v1130_v10 = vpack.c.bf16 %v52_v8, %v51_v7  ;;  %v54_v11 = vld [vmem:[#allocation2 + $0x18] sm:$0xff]  ;;  %v36_v13 = vld [vmem:[%s1536_s0 + $0x8] sm:$0xff]  ;;  %v1377_v16 = vld [vmem:[%s1540_s4] sm:$0xff] }
  0x17   :  { %1125 = vmatpush3.bf16.msra.mxu0 %v1122_v3  ;;  %v1134_v12 = vpack.c.bf16 %v54_v11, %v53_v9  ;;  %v1367_v14 = vld [vmem:[%s1540_s4 + $0x8] sm:$0xff]  ;;  %v1372_v15 = vld [vmem:[%s1540_s4 + $0x18] sm:$0xff]  ;;  %v1392_v19 = vld [vmem:[%s1540_s4 + $0x10] sm:$0xff]  ;;  %v278_v49 = vsub.s32 0, %v1419_v45 }
  0x18   :  { %1127 = vmatprep.subr.bf16.mxu0 %v1126_v6  ;;  %1131 = vmatprep.subr.bf16.mxu1 %v1130_v10  ;;  %v1382_v17 = vld [vmem:[%s1540_s4 + $0x28] sm:$0xff]  ;;  %v1387_v18 = vld [vmem:[%s1540_s4 + $0x38] sm:$0xff]  ;;  %v1397_v20 = vld [vmem:[%s1540_s4 + $0x20] sm:$0xff]  ;;  %v1443_v2 = vpack.c.bf16 %v1367_v14, %v1377_v16  ;;  %v1449_v3 = vpack.c.bf16 %v1372_v15, %v1392_v19 }
  0x19   :  { %1133 = vmatpush3.bf16.msra.mxu1 %v1130_v10  ;;  %v1402_v21 = vld [vmem:[%s1540_s4 + $0x30] sm:$0xff]  ;;  %s1294_s4 = smov 64   ;;  %v1430_v56 = vld [vmem:[%s1539_s3 + $0x8] sm:$0xff]  ;;  %v1435_v57 = vld [vmem:[%s1539_s3] sm:$0xff]  ;;  %v1454_v4 = vpack.c.bf16 %v1382_v17, %v1397_v20 }
  0x1a   :  { %1135 = vmatprep.subr.bf16.mxu1 %v1134_v12  ;;  %v1460_v5 = vpack.c.bf16 %v1387_v18, %v1402_v21 }
  0x1b   :  { %1129 = vmatpush3.bf16.msra.mxu0 %v1126_v6 }
  0x1d   :  { %1137 = vmatpush3.bf16.msra.mxu1 %v1134_v12 }
  0x1e   :  { %1011 = vmatmul.mubr.msk.f32.vlgmr.msra.gmra.mrb[0].mxu0 %vm55_vm0, %v36_v13  ;;  %1155 = vmatprep.subr.bf16.mxu1 %v1443_v2 }
  0xf1   :  { %v1012_v22 = vpop.f32.mrb[0].mxu0 }
  0xf2   :  { %v128_v23 = vpop.f32.mrb[1].mxu0  ;;  %v304_v24 = vmul.f32 %v1012_v22, %v1367_v14  ;;  %v306_v25 = vmul.f32 %v1012_v22, %v1372_v15  ;;  %v308_v26 = vmul.f32 %v1012_v22, %v1382_v17  ;;  %v310_v27 = vmul.f32 %v1012_v22, %v1387_v18 }
  0xf3   :  { %1021 = vmatprep.mubr.msk.f32.mxu1 %vm55_vm0, %v128_v23  ;;  %v303_v28 = vmul.f32 %v128_v23, %v1377_v16  ;;  %v305_v29 = vmul.f32 %v128_v23, %v1392_v19  ;;  %v307_v30 = vmul.f32 %v128_v23, %v1397_v20  ;;  %v309_v31 = vmul.f32 %v128_v23, %v1402_v21  ;;  %v927_v23 = vld [vmem:[%s1537_s1 + $0x28] sm:$0xff] }
  0xf4   :  { %1022 = vmatmul.mubr.msk.f32.vlgmr.msra.gmra.mrb[0].mxu1 %vm55_vm0, %v1012_v22  ;;  %v926_v22 = vld [vmem:[%s1537_s1 + $0x20] sm:$0xff] }
  0xf5   :  { %v1138_v32 = vpack.c.bf16 %v304_v24, %v303_v28  ;;  %v1142_v33 = vpack.c.bf16 %v306_v25, %v305_v29  ;;  %v1146_v34 = vpack.c.bf16 %v308_v26, %v307_v30  ;;  %v1150_v35 = vpack.c.bf16 %v310_v27, %v309_v31  ;;  %1157 = vmatpush3.bf16.msra.mxu1 %v1443_v2  ;;  %v928_v24 = vld [vmem:[%s1537_s1 + $0x30] sm:$0xff]  ;;  %v929_v26 = vld [vmem:[%s1537_s1 + $0x38] sm:$0xff]  ;;  %v483_v28 = vld [vmem:[#allocation2 + $0x20] sm:$0xff]  ;;  %s1298_s1 = smov [#allocation5]  }
  0xf6   :  { %1159 = vmatprep.subr.bf16.mxu1 %v1449_v3  ;;  %v1170_v25 = vpack.c.bf16 %v927_v23, %v926_v22  ;;  %v1174_v27 = vpack.c.bf16 %v929_v26, %v928_v24  ;;  %v484_v29 = vld [vmem:[#allocation2 + $0x28] sm:$0xff]  ;;  %v485_v30 = vld [vmem:[#allocation2 + $0x30] sm:$0xff]  ;;  %s906_s23 = sshll.u32 %s1298_s1, 4  ;;  %s907_s23 = int_to_ptr.vmem [resolvable:$true] %s906_s23 }
  0xf7   :  { %1139 = vmatprep.subr.bf16.mxu0 %v1138_v32  ;;  %v1178_v31 = vpack.c.bf16 %v484_v29, %v483_v28  ;;  %s1265_s24 = scalar_lea.vmem %s907_s23, 256  ;;  %p1270_p9 = scmp.lt.s32.totalorder %s907_s23, %s907_s23 }
  0xf8   :  { %1141 = vmatpush3.bf16.msra.mxu0 %v1138_v32  ;;  %v486_v32 = vld [vmem:[#allocation2 + $0x38] sm:$0xff]  ;;  %p1266_p8 = scmp.ne.s32.totalorder %s907_s23, %s1265_s24  ;;  %p1271_p10 = scmp.lt.s32.totalorder %s1265_s24, %s1265_s24 }
  0xf9   :  { %1143 = vmatprep.subr.bf16.mxu0 %v1142_v33  ;;  %1161 = vmatpush3.bf16.msra.mxu1 %v1449_v3 }
  0xfa   :  { %1163 = vmatprep.subr.bf16.mxu1 %v1454_v4  ;;  %p1272_p11 = por %p1271_p10, %p1270_p9 }
  0xfc   :  { %1145 = vmatpush3.bf16.msra.mxu0 %v1142_v33  ;;  %v1182_v33 = vpack.c.bf16 %v486_v32, %v485_v30  ;;  %p1273_p12 = pnand %p1272_p11, %p1266_p8 }
  0xfd   :  { %1147 = vmatprep.subr.bf16.mxu0 %v1146_v34  ;;  %1165 = vmatpush3.bf16.msra.mxu1 %v1454_v4 }
  0xfe   :  { %1167 = vmatprep.subr.bf16.mxu1 %v1460_v5 }
 0x100   :  { %1149 = vmatpush3.bf16.msra.mxu0 %v1146_v34 }
 0x101   :  { %1151 = vmatprep.subr.bf16.mxu0 %v1150_v35  ;;  %1169 = vmatpush3.bf16.msra.mxu1 %v1460_v5 }
 0x102   :  { %1179 = vmatprep.subr.bf16.mxu1 %v1178_v31 }
 0x104   :  { %1153 = vmatpush3.bf16.msra.mxu0 %v1150_v35 }
 0x105   :  { %1171 = vmatprep.subr.bf16.mxu0 %v1170_v25 }
 0x1c7   :  { %v1023_v36 = vpop.f32.mrb[0].mxu1 }
 0x1c8   :  { %v209_v37 = vpop.f32.mrb[1].mxu1 }
 0x1c9   :  { %220 = vrot.lane.b32.xlu0 %v209_v37, %s1294_s4 }
 0x1cd   :  { %222 = vrot.lane.b32.xlu0 %v1023_v36, %s1294_s4 }
 0x23b   :  { %v221_v38 = vpop.permute.xlu0 %220 }
 0x23c   :  { %226 = vxpose.xlu1.b32.start [1/2] (short) (narrow) %v221_v38, 8 }
 0x23f   :  { %v223_v39 = vpop.permute.xlu0 %222 }
 0x240   :  { %227 = vxpose.xlu1.b32.end [2/2] (short) (narrow) %v223_v39, 8 }
 0x2bc   :  { %v242_v40 = vpop.trf.xlu1 }
 0x2bd   :  { %v263_v41 = vrot.slane %v242_v40, 2  ;;  %v259_v42 = vrot.slane %v242_v40, 1  ;;  %v267_v43 = vrot.slane %v242_v40, 3 }
 0x2bf   :  { %264 = vrot.lane.b32.xlu1 %v263_v41, %s1295_s10  ;;  %260 = vrot.lane.b32.xlu0 %v259_v42, %s1296_s11 }
 0x2c3   :  { %268 = vrot.lane.b32.xlu0 %v267_v43, %s1297_s12 }
 0x331   :  { %v261_v46 = vpop.permute.xlu0 %260  ;;  %v265_v47 = vpop.permute.xlu1 %264 }
 0x332   :  { %v272_v48 = vsel %vm271_vm1, %v242_v40, %v261_v46 }
 0x333   :  { %v273_v50 = vsel %vm55_vm0, %v272_v48, %v265_v47 }
 0x335   :  { %v269_v51 = vpop.permute.xlu0 %268 }
 0x336   :  { %v275_v52 = vsel %vm274_vm2, %v273_v50, %v269_v51 }
 0x337   :  { %v279_v53 = vrot.slane %v275_v52, %v278_v49 }
 0x339   :  { %v280_v54 = vadd.f32 %v279_v53, %v209_v37  ;;  %v281_v55 = vadd.f32 %v1023_v36, %v279_v53 }
 0x33b   :  { %vm283_vm3 = vcmp.ge.f32.partialorder %v281_v55, 0.0  ;;  %v285_v58 = vmul.f32 0.2, %v281_v55  ;;  %vm282_vm4 = vcmp.ge.f32.partialorder %v280_v54, 0.0  ;;  %v284_v59 = vmul.f32 0.2, %v280_v54 }
 0x33d   :  { %v287_v60 = vsel %vm283_vm3, %v281_v55, %v285_v58  ;;  %v286_v61 = vsel %vm282_vm4, %v280_v54, %v284_v59 }
 0x33e   :  { %v289_v62 = vadd.f32 %v287_v60, %v1430_v56  ;;  %v288_v63 = vadd.f32 %v286_v61, %v1435_v57 }
 0x340   :  { %v294_v0 = vsel %vm290_vm5, %v289_v62, -inf  ;;  %v291_v1 = vsel %vm290_vm5, %v288_v63, -inf }
 0x341   :  { %295 = vmax.xlane.f32.xlu1 %v294_v0  ;;  %292 = vmax.xlane.f32.xlu0 %v291_v1 }
 0x3ce   :  { %v296_v6 = vpop.xlane.xlu1 %295  ;;  %v293_v7 = vpop.xlane.xlu0 %292 }
 0x3cf   :  { %v298_v8 = vsub.f32 %v289_v62, %v296_v6  ;;  %v297_v9 = vsub.f32 %v288_v63, %v293_v7 }
 0x3d1   :  { %v301_v10 = vmul.f32 1.442695, %v298_v8  ;;  %v299_v11 = vmul.f32 1.442695, %v297_v9 }
 0x3d3   :  { %1227 = vpow2.f32 %v301_v10 }
 0x3d4   :  { %1229 = vpow2.f32 %v299_v11 }
 0x3dd   :  { %v1228_v12 = vpop.eup %1227 }
 0x3de   :  { %v1230_v13 = vpop.eup %1229 }
 0x3df   :  { %1040 = vmatprep.mubr.msk.f32.mxu0 %vm290_vm5, %v1230_v13  ;;  %1059 = vmatprep.mubr.msk.f32.mxu1 %vm290_vm5, %v1230_v13 }
 0x3e0   :  { %1041 = vmatmul.mubr.msk.f32.vlgmr.msra.gmra.mrb[2].mxu0 %vm290_vm5, %v1228_v12  ;;  %1060 = vmatmul.mubr.msk.f32.vlgmr.msra.gmra.mrb[2].mxu1 %vm290_vm5, %v1228_v12 }
 0x3e1   :  { %1173 = vmatpush3.bf16.msra.mxu0 %v1170_v25  ;;  %1181 = vmatpush3.bf16.msra.mxu1 %v1178_v31 }
 0x3e2   :  { %1175 = vmatprep.subr.bf16.mxu0 %v1174_v27  ;;  %1183 = vmatprep.subr.bf16.mxu1 %v1182_v33 }
 0x3e5   :  { %1177 = vmatpush3.bf16.msra.mxu0 %v1174_v27  ;;  %1185 = vmatpush3.bf16.msra.mxu1 %v1182_v33 }
 0x3e6   :  { %1203 = vmatprep.subr.bf16.mxu1 %v1443_v2 }
 0x4b3   :  { %v1042_v34 = vpop.f32.mrb[2].mxu0  ;;  %v1061_v35 = vpop.f32.mrb[2].mxu1 }
 0x4b4   :  { %1231 = vrcp.f32 %v1061_v35  ;;  %v383_v36 = vpop.f32.mrb[3].mxu0  ;;  %v458_v37 = vpop.f32.mrb[3].mxu1 }
 0x4b5   :  { %1233 = vrcp.f32 %v458_v37 }
 0x4be   :  { %v1232_v38 = vpop.eup %1231 }
 0x4bf   :  { %v1234_v39 = vpop.eup %1233  ;;  %v470_v40 = vmul.f32 %v1232_v38, %v1042_v34 }
 0x4c0   :  { %v468_v41 = vmul.f32 %v1234_v39, %v383_v36 }
 0x4c1   :  { %v474_v42 = vmul.f32 0.01, %v470_v40  ;;  %vm472_vm7 = vcmp.ge.f32.partialorder %v470_v40, 0.0 }
 0x4c2   :  { %vm471_vm6 = vcmp.ge.f32.partialorder %v468_v41, 0.0  ;;  %v473_v43 = vmul.f32 0.01, %v468_v41 }
 0x4c3   :  { %v476_v46 = vsel %vm472_vm7, %v470_v40, %v474_v42 }
 0x4c4   :  { %v475_v44 = vsel %vm471_vm6, %v468_v41, %v473_v43 }
 0x4c5   :  { %1070 = vmatprep.mubr.msk.f32.mxu0 %vm55_vm0, %v475_v44 }
 0x4c6   :  { %1071 = vmatmul.mubr.msk.f32.vlgmr.msra.gmra.mrb[4].mxu0 %vm55_vm0, %v476_v46 }
 0x599   :  { %v1072_v47 = vpop.f32.mrb[4].mxu0 }
 0x59a   :  { %v559_v48 = vpop.f32.mrb[5].mxu0  ;;  %v732_v50 = vmul.f32 %v1072_v47, %v1367_v14  ;;  %v734_v51 = vmul.f32 %v1072_v47, %v1372_v15  ;;  %v736_v52 = vmul.f32 %v1072_v47, %v1382_v17  ;;  %v738_v53 = vmul.f32 %v1072_v47, %v1387_v18 }
 0x59b   :  { %1081 = vmatprep.mubr.msk.f32.mxu1 %vm55_vm0, %v559_v48  ;;  %v731_v54 = vmul.f32 %v559_v48, %v1377_v16  ;;  %v733_v55 = vmul.f32 %v559_v48, %v1392_v19  ;;  %v735_v58 = vmul.f32 %v559_v48, %v1397_v20  ;;  %v737_v59 = vmul.f32 %v559_v48, %v1402_v21 }
 0x59c   :  { %1082 = vmatmul.mubr.msk.f32.vlgmr.msra.gmra.mrb[4].mxu1 %vm55_vm0, %v1072_v47 }
 0x59d   :  { %v1186_v60 = vpack.c.bf16 %v732_v50, %v731_v54  ;;  %v1190_v14 = vpack.c.bf16 %v734_v51, %v733_v55  ;;  %v1194_v61 = vpack.c.bf16 %v736_v52, %v735_v58  ;;  %v1198_v15 = vpack.c.bf16 %v738_v53, %v737_v59  ;;  %1205 = vmatpush3.bf16.msra.mxu1 %v1443_v2 }
 0x59e   :  { %1207 = vmatprep.subr.bf16.mxu1 %v1449_v3 }
 0x59f   :  { %1187 = vmatprep.subr.bf16.mxu0 %v1186_v60 }
 0x5a0   :  { %1189 = vmatpush3.bf16.msra.mxu0 %v1186_v60 }
 0x5a1   :  { %1191 = vmatprep.subr.bf16.mxu0 %v1190_v14  ;;  %1209 = vmatpush3.bf16.msra.mxu1 %v1449_v3 }
 0x5a2   :  { %1211 = vmatprep.subr.bf16.mxu1 %v1454_v4 }
 0x5a4   :  { %1193 = vmatpush3.bf16.msra.mxu0 %v1190_v14 }
 0x5a5   :  { %1195 = vmatprep.subr.bf16.mxu0 %v1194_v61  ;;  %1213 = vmatpush3.bf16.msra.mxu1 %v1454_v4 }
 0x5a6   :  { %1215 = vmatprep.subr.bf16.mxu1 %v1460_v5 }
 0x5a8   :  { %1197 = vmatpush3.bf16.msra.mxu0 %v1194_v61 }
 0x5a9   :  { %1199 = vmatprep.subr.bf16.mxu0 %v1198_v15  ;;  %1217 = vmatpush3.bf16.msra.mxu1 %v1460_v5 }
 0x5ac   :  { %1201 = vmatpush3.bf16.msra.mxu0 %v1198_v15 }
 0x66f   :  { %v1083_v16 = vpop.f32.mrb[4].mxu1 }
 0x670   :  { %v640_v17 = vpop.f32.mrb[5].mxu1 }
 0x671   :  { %651 = vrot.lane.b32.xlu0 %v640_v17, %s1294_s4 }
 0x675   :  { %653 = vrot.lane.b32.xlu0 %v1083_v16, %s1294_s4 }
 0x6e3   :  { %v652_v18 = vpop.permute.xlu0 %651 }
 0x6e4   :  { %657 = vxpose.xlu0.b32.start [1/2] (short) (narrow) %v652_v18, 8 }
 0x6e7   :  { %v654_v19 = vpop.permute.xlu0 %653 }
 0x6e8   :  { %658 = vxpose.xlu0.b32.end [2/2] (short) (narrow) %v654_v19, 8 }
 0x764   :  { %v673_v20 = vpop.trf.xlu0 }
 0x765   :  { %v690_v21 = vrot.slane %v673_v20, 1  ;;  %v694_v62 = vrot.slane %v673_v20, 2  ;;  %v698_v63 = vrot.slane %v673_v20, 3 }
 0x767   :  { %691 = vrot.lane.b32.xlu1 %v690_v21, %s1296_s11 }
 0x76b   :  { %695 = vrot.lane.b32.xlu1 %v694_v62, %s1295_s10 }
 0x76f   :  { %699 = vrot.lane.b32.xlu1 %v698_v63, %s1297_s12 }
 0x7d9   :  { %v692_v0 = vpop.permute.xlu1 %691 }
 0x7da   :  { %v702_v2 = vsel %vm271_vm1, %v673_v20, %v692_v0 }
 0x7dd   :  { %v696_v1 = vpop.permute.xlu1 %695 }
 0x7de   :  { %v703_v3 = vsel %vm55_vm0, %v702_v2, %v696_v1 }
 0x7e1   :  { %v700_v4 = vpop.permute.xlu1 %699 }
 0x7e2   :  { %v704_v5 = vsel %vm274_vm2, %v703_v3, %v700_v4 }
 0x7e3   :  { %v708_v6 = vrot.slane %v704_v5, %v278_v49 }
 0x7e5   :  { %v709_v7 = vadd.f32 %v708_v6, %v640_v17  ;;  %v710_v8 = vadd.f32 %v1083_v16, %v708_v6 }
 0x7e7   :  { %vm712_vm8 = vcmp.ge.f32.partialorder %v710_v8, 0.0  ;;  %v714_v9 = vmul.f32 0.2, %v710_v8  ;;  %vm711_vm9 = vcmp.ge.f32.partialorder %v709_v7, 0.0  ;;  %v713_v10 = vmul.f32 0.2, %v709_v7 }
 0x7e9   :  { %v716_v11 = vsel %vm712_vm8, %v710_v8, %v714_v9  ;;  %v715_v12 = vsel %vm711_vm9, %v709_v7, %v713_v10 }
 0x7ea   :  { %v718_v13 = vadd.f32 %v716_v11, %v1430_v56  ;;  %v717_v22 = vadd.f32 %v715_v12, %v1435_v57 }
 0x7ec   :  { %v722_v23 = vsel %vm290_vm5, %v718_v13, -inf  ;;  %v719_v24 = vsel %vm290_vm5, %v717_v22, -inf }
 0x7ed   :  { %723 = vmax.xlane.f32.xlu0 %v722_v23  ;;  %720 = vmax.xlane.f32.xlu1 %v719_v24 }
 0x87a   :  { %v724_v45 = vpop.xlane.xlu0 %723  ;;  %v721_v49 = vpop.xlane.xlu1 %720 }
 0x87b   :  { %v726_v25 = vsub.f32 %v718_v13, %v724_v45  ;;  %v725_v26 = vsub.f32 %v717_v22, %v721_v49 }
 0x87d   :  { %v729_v27 = vmul.f32 1.442695, %v726_v25  ;;  %v727_v28 = vmul.f32 1.442695, %v725_v26 }
 0x87f   :  { %1235 = vpow2.f32 %v729_v27 }
 0x880   :  { %1237 = vpow2.f32 %v727_v28 }
 0x889   :  { %v1236_v29 = vpop.eup %1235 }
 0x88a   :  { %v1238_v30 = vpop.eup %1237 }
 0x88b   :  { %1100 = vmatprep.mubr.msk.f32.mxu0 %vm290_vm5, %v1238_v30  ;;  %1119 = vmatprep.mubr.msk.f32.mxu1 %vm290_vm5, %v1238_v30 }
 0x88c   :  { %1101 = vmatmul.mubr.msk.f32.vlgmr.msra.gmra.mrb[6].mxu0 %vm290_vm5, %v1236_v29  ;;  %1120 = vmatmul.mubr.msk.f32.vlgmr.msra.gmra.mrb[6].mxu1 %vm290_vm5, %v1236_v29 }
 0x95f   :  { %v1102_v56 = vpop.f32.mrb[6].mxu0  ;;  %v1121_v57 = vpop.f32.mrb[6].mxu1 }
 0x960   :  { %1239 = vrcp.f32 %v1121_v57  ;;  %v811_v31 = vpop.f32.mrb[7].mxu0  ;;  %v886_v32 = vpop.f32.mrb[7].mxu1 }
 0x961   :  { %1241 = vrcp.f32 %v886_v32 }
 0x96a   :  { %v1240_v33 = vpop.eup %1239 }
 0x96b   :  { %v1242_v34 = vpop.eup %1241  ;;  %v898_v35 = vmul.f32 %v1240_v33, %v1102_v56 }
 0x96c   :  { %v896_v36 = vmul.f32 %v1242_v34, %v811_v31 }
 0x96d   :  { %900 = vst.msk [vmem:[#allocation5 + $0x8] sm:$0xff] %vm55_vm0, %v898_v35 }
 0x96e   :  { %899 = vst.msk [vmem:[#allocation5] sm:$0xff] %vm55_vm0, %v896_v36 }
 0x96f   :  { %1276 = shalt.err (!%p1273_p12)
}
 0x970   :  { %s1277_s26 = scalar_lea.hbm %s1541_s5, 256 }
 0x971   :  { %p1278_p13 = scmp.ne.s32.totalorder %s1541_s5, %s1277_s26  ;;  %p1281_p0 = scmp.lt.u32.totalorder %s1277_s26, %s1541_s5 }
 0x973   :  { %p1283_p1 = pnand %p1281_p0, %p1278_p13 }
 0x975   :  { %1286 = shalt.err (!%p1283_p1)
}
 0x976   :  { %912 = dma.vmem_to_hbm [thread:$0]  %s907_s23, 256, %s1541_s5, [#allocation4], %s1292_s28, %s1292_s28, %s1293_s29  }
 0x977   :  { %1289 = dma.done.wait [#allocation4], 256  }
 0x978   :  { %1290 = vsyncadd [#allocation4], 4294967040 }
 0x979   :  { %916 = vsyncpa [#allocation3], 1 }
 0x97a   :  { %917 = vsyncpa [#allocation4], 1 }

</bundles_post_ra>
